<compile_context>
chip_gen: v7x
topology: tpu7x:2x2x1
jax: 0.10.0
libtpu: 0.0.40
codegen_flags: <defaults>
</compile_context>

<pallas_src>
import functools
import math

import jax
import jax.numpy as jnp
from jax.experimental import pallas as pl
from jax.experimental.pallas import tpu as pltpu

LN_EPS = 1e-5                      # torch.nn.LayerNorm default eps
NEG_INF = -1000000000.0            # torch masked_fill value in Attention
VMEM_LIMIT = 64 * 1024 * 1024      # fits v7x 64 MiB VMEM; well under v5e/v6e


def _pick_tile(n, cap, quantum):
    """Largest divisor of n that is <= cap and a multiple of `quantum`.
    Falls back to the full dimension (single block) if none exists."""
    if n <= cap:
        return n
    t = (cap // quantum) * quantum
    while t >= quantum:
        if n % t == 0:
            return t
        t -= quantum
    return n


# ---------------------------------------------------------------------------
# Kernel 1: fused LayerNorm -> matmul (+ bias) (+ exact GELU).
#   out = act(LN(x) * g + b) @ W (+ wb)
# ---------------------------------------------------------------------------
def _ln_matmul_kernel(*refs, has_bias, activation):
    if has_bias:
        x_ref, g_ref, b_ref, w_ref, wb_ref, o_ref = refs
    else:
        x_ref, g_ref, b_ref, w_ref, o_ref = refs
        wb_ref = None
    x = x_ref[...].astype(jnp.float32)           # keep VPU math in f32 (v5e)
    mu = jnp.mean(x, axis=-1, keepdims=True)
    xc = x - mu
    var = jnp.mean(xc * xc, axis=-1, keepdims=True)
    xn = xc * jax.lax.rsqrt(var + LN_EPS)
    xn = xn * g_ref[...].astype(jnp.float32) + b_ref[...].astype(jnp.float32)
    acc = jnp.dot(xn, w_ref[...].astype(jnp.float32),
                  preferred_element_type=jnp.float32)
    if has_bias:
        acc = acc + wb_ref[...].astype(jnp.float32)
    if activation == "gelu":
        acc = jax.nn.gelu(acc, approximate=False)   # exact (erf) GELU == nn.GELU()
    o_ref[...] = acc.astype(o_ref.dtype)


def ln_matmul(x2d, gamma, beta, w, bias=None, activation=None,
              row_tile=512, col_tile=512):
    R, K = x2d.shape
    Kw, N = w.shape
    assert K == Kw
    TM = _pick_tile(R, row_tile, 8)
    TN = _pick_tile(N, col_tile, 128)
    has_bias = bias is not None

    in_specs = [
        pl.BlockSpec((TM, K), lambda i, j: (i, 0)),
        pl.BlockSpec((1, K), lambda i, j: (0, 0)),
        pl.BlockSpec((1, K), lambda i, j: (0, 0)),
        pl.BlockSpec((K, TN), lambda i, j: (0, j)),
    ]
    args = [x2d, gamma.reshape(1, K), beta.reshape(1, K), w]
    if has_bias:
        in_specs.append(pl.BlockSpec((1, TN), lambda i, j: (0, j)))
        args.append(bias.reshape(1, N))

    flops = 2 * R * K * N + 8 * R * K
    trans = R * (N if activation == "gelu" else 1)
    bytes_accessed = 4 * (R * K + K * N + R * N + 2 * K + (N if has_bias else 0))

    return pl.pallas_call(
        functools.partial(_ln_matmul_kernel, has_bias=has_bias,
                          activation=activation),
        out_shape=jax.ShapeDtypeStruct((R, N), x2d.dtype),
        grid=(R // TM, N // TN),
        in_specs=in_specs,
        out_specs=pl.BlockSpec((TM, TN), lambda i, j: (i, j)),
        compiler_params=pltpu.CompilerParams(
            dimension_semantics=("parallel", "parallel"),
            vmem_limit_bytes=VMEM_LIMIT),
        cost_estimate=pl.CostEstimate(flops=flops, transcendentals=trans,
                                      bytes_accessed=bytes_accessed),
    )(*args)


# ---------------------------------------------------------------------------
# Kernel 2: scaled-dot-product attention, one (batch, head) per grid step.
# ---------------------------------------------------------------------------
def _attention_kernel(*refs, has_mask, sm_scale):
    if has_mask:
        q_ref, k_ref, v_ref, m_ref, o_ref = refs
    else:
        q_ref, k_ref, v_ref, o_ref = refs
        m_ref = None
    q = q_ref[0].astype(jnp.float32)
    k = k_ref[0].astype(jnp.float32)
    v = v_ref[0].astype(jnp.float32)
    s = jnp.dot(q, k.T, preferred_element_type=jnp.float32) * sm_scale
    if has_mask:
        m = m_ref[0].astype(jnp.float32)
        s = jnp.where(m == 0.0, NEG_INF, s)
    s_max = jnp.max(s, axis=-1, keepdims=True)
    p = jnp.exp(s - s_max)
    p = p / jnp.sum(p, axis=-1, keepdims=True)
    if has_mask:
        p = jnp.where(m == 0.0, 0.0, p)
    # TODO(synk): train-mode attention-prob dropout omitted (eval forward).
    o_ref[0] = jnp.dot(p, v, preferred_element_type=jnp.float32).astype(o_ref.dtype)


def attention(q, k, v, mask3, heads):
    BH, S, dk = q.shape
    has_mask = mask3 is not None
    sm_scale = 1.0 / math.sqrt(dk)

    qkv_spec = pl.BlockSpec((1, S, dk), lambda i: (i, 0, 0))
    in_specs = [qkv_spec, qkv_spec, qkv_spec]
    args = [q, k, v]
    if has_mask:
        in_specs.append(pl.BlockSpec((1, S, S), lambda i: (i // heads, 0, 0)))
        args.append(mask3)

    flops = BH * (4 * S * S * dk + 6 * S * S)
    mask_bytes = 4 * mask3.size if has_mask else 0
    bytes_accessed = 4 * (q.size + k.size + v.size + q.size) + mask_bytes

    return pl.pallas_call(
        functools.partial(_attention_kernel, has_mask=has_mask,
                          sm_scale=sm_scale),
        out_shape=jax.ShapeDtypeStruct((BH, S, dk), q.dtype),
        grid=(BH,),
        in_specs=in_specs,
        out_specs=pl.BlockSpec((1, S, dk), lambda i: (i, 0, 0)),
        compiler_params=pltpu.CompilerParams(
            dimension_semantics=("parallel",),
            vmem_limit_bytes=VMEM_LIMIT),
        cost_estimate=pl.CostEstimate(flops=flops, transcendentals=BH * S * S,
                                      bytes_accessed=bytes_accessed),
    )(*args)


# ---------------------------------------------------------------------------
# Kernel 3: fused matmul (+ bias) + per-row mask + residual add.
#   out = x + rowscale * (h @ W (+ wb))
# ---------------------------------------------------------------------------
def _matmul_residual_kernel(*refs, has_bias):
    if has_bias:
        x_ref, h_ref, w_ref, wb_ref, rs_ref, o_ref = refs
    else:
        x_ref, h_ref, w_ref, rs_ref, o_ref = refs
        wb_ref = None
    h = h_ref[...].astype(jnp.float32)
    acc = jnp.dot(h, w_ref[...].astype(jnp.float32),
                  preferred_element_type=jnp.float32)
    if has_bias:
        acc = acc + wb_ref[...].astype(jnp.float32)
    acc = acc * rs_ref[...].astype(jnp.float32)   # (TM,1) row mask (1.0 if none)
    # TODO(synk): train-mode sublayer dropout (on `acc` before the residual)
    # omitted; eval forward implemented.
    o_ref[...] = (x_ref[...].astype(jnp.float32) + acc).astype(o_ref.dtype)


def matmul_residual(x2d, h2d, w, bias, rowscale, row_tile=512, col_tile=512):
    R, N = x2d.shape
    K = h2d.shape[1]
    assert w.shape == (K, N)
    TM = _pick_tile(R, row_tile, 8)
    TN = _pick_tile(N, col_tile, 128)
    has_bias = bias is not None

    in_specs = [
        pl.BlockSpec((TM, TN), lambda i, j: (i, j)),   # residual x
        pl.BlockSpec((TM, K), lambda i, j: (i, 0)),    # sublayer hidden
        pl.BlockSpec((K, TN), lambda i, j: (0, j)),    # weight
    ]
    args = [x2d, h2d, w]
    if has_bias:
        in_specs.append(pl.BlockSpec((1, TN), lambda i, j: (0, j)))
        args.append(bias.reshape(1, N))
    in_specs.append(pl.BlockSpec((TM, 1), lambda i, j: (i, 0)))  # rowscale
    args.append(rowscale)

    flops = 2 * R * K * N + 3 * R * N
    bytes_accessed = 4 * (2 * R * N + R * K + K * N + R)

    return pl.pallas_call(
        functools.partial(_matmul_residual_kernel, has_bias=has_bias),
        out_shape=jax.ShapeDtypeStruct((R, N), x2d.dtype),
        grid=(R // TM, N // TN),
        in_specs=in_specs,
        out_specs=pl.BlockSpec((TM, TN), lambda i, j: (i, j)),
        compiler_params=pltpu.CompilerParams(
            dimension_semantics=("parallel", "parallel"),
            vmem_limit_bytes=VMEM_LIMIT),
        cost_estimate=pl.CostEstimate(flops=flops, transcendentals=0,
                                      bytes_accessed=bytes_accessed),
    )(*args)


# ---------------------------------------------------------------------------
# TransformerBlock / TransformerLayer forward (eval mode).
# ---------------------------------------------------------------------------
def transformer_block_forward(x, p, mask3, rowscale, heads):
    B, S, H = x.shape
    R = B * S
    dk = H // heads
    x2 = x.reshape(R, H)

    # input_sublayer: x + OutLinear(MHA(LN1(x)))
    qkv = ln_matmul(x2, p["ln1_g"], p["ln1_b"], p["w_qkv"])         # (R, 3H)
    qkv = qkv.reshape(B, S, 3, heads, dk)
    q = qkv[:, :, 0].transpose(0, 2, 1, 3).reshape(B * heads, S, dk)
    k = qkv[:, :, 1].transpose(0, 2, 1, 3).reshape(B * heads, S, dk)
    v = qkv[:, :, 2].transpose(0, 2, 1, 3).reshape(B * heads, S, dk)
    ctx = attention(q, k, v, mask3, heads)                          # (B*h,S,dk)
    ctx = ctx.reshape(B, heads, S, dk).transpose(0, 2, 1, 3).reshape(R, H)
    ones = jnp.ones((R, 1), x.dtype)
    x2 = matmul_residual(x2, ctx, p["w_out"], None, ones)

    # output_sublayer: x + rowmask * (W2(GELU(W1(LN2(x)) + b1)) + b2)
    hid = ln_matmul(x2, p["ln2_g"], p["ln2_b"], p["w_ff1"],
                    bias=p["b_ff1"], activation="gelu")             # (R, 4H)
    x2 = matmul_residual(x2, hid, p["w_ff2"], p["b_ff2"], rowscale)

    # TODO(synk): trailing TransformerBlock dropout omitted (identity in eval).
    return x2.reshape(B, S, H)


def transformer_layer_forward(x, layer_params, mask=None, heads=1):
    """Pallas eval-mode forward of TransformerLayer: returns (emb, cls_emb)."""
    B, S, H = x.shape
    if mask is not None:
        mask3 = jnp.einsum("ab,ac->abc", mask, mask).astype(x.dtype)
        rowscale = (jnp.sum(mask3, axis=-1) > 0).astype(x.dtype).reshape(B * S, 1)
    else:
        mask3 = None
        rowscale = jnp.ones((B * S, 1), x.dtype)
    for p in layer_params:
        x = transformer_block_forward(x, p, mask3, rowscale, heads)
    return x, x[:, 0, :]


# ---------------------------------------------------------------------------
# Pure-JAX reference (mirrors the PyTorch module in eval mode).
# ---------------------------------------------------------------------------
def reference_forward(x, layer_params, mask, heads):
    mask3 = jnp.einsum("ab,ac->abc", mask, mask) if mask is not None else None

    def layernorm(t, g, b):
        mu = jnp.mean(t, axis=-1, keepdims=True)
        var = jnp.mean((t - mu) ** 2, axis=-1, keepdims=True)
        return (t - mu) * jax.lax.rsqrt(var + LN_EPS) * g + b

    B, S, H = x.shape
    dk = H // heads
    for p in layer_params:
        xn = layernorm(x, p["ln1_g"], p["ln1_b"])
        qkv = (xn @ p["w_qkv"]).reshape(B, S, 3, heads, dk)
        q = qkv[:, :, 0].transpose(0, 2, 1, 3)
        k = qkv[:, :, 1].transpose(0, 2, 1, 3)
        v = qkv[:, :, 2].transpose(0, 2, 1, 3)
        s = jnp.einsum("bhqd,bhkd->bhqk", q, k) / math.sqrt(dk)
        if mask3 is not None:
            m = mask3[:, None]
            s = jnp.where(m == 0, NEG_INF, s)
        pattn = jax.nn.softmax(s, axis=-1)
        if mask3 is not None:
            pattn = jnp.where(m == 0, 0.0, pattn)
        ctx = jnp.einsum("bhqk,bhkd->bhqd", pattn, v)
        ctx = ctx.transpose(0, 2, 1, 3).reshape(B, S, H)
        x = x + ctx @ p["w_out"]

        xn = layernorm(x, p["ln2_g"], p["ln2_b"])
        hid = jax.nn.gelu(xn @ p["w_ff1"] + p["b_ff1"], approximate=False)
        ff = hid @ p["w_ff2"] + p["b_ff2"]
        if mask3 is not None:
            rowm = (jnp.sum(mask3, axis=-1) > 0).astype(x.dtype)
            ff = ff * rowm[..., None]
        x = x + ff
    return x, x[:, 0, :]


def init_params(key, H, d_ff, num_layers, dtype=jnp.float32):
    params = []
    for l in range(num_layers):
        ks = jax.random.split(jax.random.fold_in(key, l), 10)
        s_in = 1.0 / math.sqrt(H)
        s_ff = 1.0 / math.sqrt(d_ff)
        params.append({
            "ln1_g": 1.0 + 0.1 * jax.random.normal(ks[0], (H,), dtype),
            "ln1_b": 0.1 * jax.random.normal(ks[1], (H,), dtype),
            "w_qkv": s_in * jax.random.normal(ks[2], (H, 3 * H), dtype),
            "w_out": s_in * jax.random.normal(ks[3], (H, H), dtype),
            "ln2_g": 1.0 + 0.1 * jax.random.normal(ks[4], (H,), dtype),
            "ln2_b": 0.1 * jax.random.normal(ks[5], (H,), dtype),
            "w_ff1": s_in * jax.random.normal(ks[6], (H, d_ff), dtype),
            "b_ff1": 0.1 * jax.random.normal(ks[7], (d_ff,), dtype),
            "w_ff2": s_ff * jax.random.normal(ks[8], (d_ff, H), dtype),
            "b_ff2": 0.1 * jax.random.normal(ks[9], (H,), dtype),
        })
    return params


if __name__ == "__main__":
    B, S, H, heads, num_layers = 2, 8, 32, 2, 1
    d_ff = 4 * H

    key = jax.random.PRNGKey(0)
    kx, kp = jax.random.split(key, 2)
    x = jax.random.normal(kx, (B, S, H), dtype=jnp.float32)
    params = init_params(kp, H, d_ff, num_layers)

    # --- no mask (mask=None path) ------------------------------------------
    emb, cls_emb = transformer_layer_forward(x, params, mask=None, heads=heads)
    emb, cls_emb = jax.block_until_ready((emb, cls_emb))
    with jax.default_matmul_precision("float32"):
        ref_emb, ref_cls = reference_forward(x, params, None, heads)
    # Tolerance covers MXU multi-pass f32 vs XLA f32 matmul differences.
    assert jnp.allclose(emb, ref_emb, atol=5e-3, rtol=5e-3), "emb mismatch"
    assert jnp.allclose(cls_emb, ref_cls, atol=5e-3, rtol=5e-3), "cls mismatch"

    # --- with a (B, S) padding mask ----------------------------------------
    mask = jnp.array([[1, 1, 1, 1, 1, 1, 1, 1],
                      [1, 1, 1, 1, 1, 0, 0, 0]], dtype=jnp.float32)
    emb_m, cls_m = transformer_layer_forward(x, params, mask=mask, heads=heads)
    emb_m, cls_m = jax.block_until_ready((emb_m, cls_m))
    with jax.default_matmul_precision("float32"):
        ref_emb_m, ref_cls_m = reference_forward(x, params, mask, heads)
    assert jnp.allclose(emb_m, ref_emb_m, atol=5e-3, rtol=5e-3), "masked emb mismatch"
    assert jnp.allclose(cls_m, ref_cls_m, atol=5e-3, rtol=5e-3), "masked cls mismatch"

    print("KERNEL_OK")
</pallas_src>

<mosaic_0001>
module attributes {stable_mosaic.version = 11 : i64} {
  func.func @_ln_matmul_kernel(%arg0: i32, %arg1: i32, %arg2: memref<16x32xf32, #tpu.memory_space<vmem>>, %arg3: memref<1x32xf32, #tpu.memory_space<vmem>>, %arg4: memref<1x32xf32, #tpu.memory_space<vmem>>, %arg5: memref<32x96xf32, #tpu.memory_space<vmem>>, %arg6: memref<16x96xf32, #tpu.memory_space<vmem>>) attributes {dimension_semantics = [#tpu.dimension_semantics<parallel>, #tpu.dimension_semantics<parallel>], iteration_bounds = array<i64: 1, 1>, scalar_prefetch = 0 : i64, scratch_operands = 0 : i64, tpu.core_type = #tpu.core_type<tc>, window_params = [{transform_indices = @transform_0, window_bounds = array<i64: 16, 32>}, {pipeline_mode = #tpu.pipeline_mode<synchronous>, transform_indices = @transform_1, window_bounds = array<i64: 1, 32>}, {pipeline_mode = #tpu.pipeline_mode<synchronous>, transform_indices = @transform_2, window_bounds = array<i64: 1, 32>}, {transform_indices = @transform_3, window_bounds = array<i64: 32, 96>}, {transform_indices = @transform_4, window_bounds = array<i64: 16, 96>}]} {
    %c0 = arith.constant 0 : index
    %c0_0 = arith.constant 0 : index
    %0 = vector.load %arg2[%c0, %c0_0] : memref<16x32xf32, #tpu.memory_space<vmem>>, vector<16x32xf32>
    %cst = arith.constant dense<0.000000e+00> : vector<16xf32>
    %1 = vector.multi_reduction <add>, %0, %cst [1] : vector<16x32xf32> to vector<16xf32>
    %2 = vector.shape_cast %1 : vector<16xf32> to vector<16x1xf32>
    %cst_1 = arith.constant 3.200000e+01 : f32
    %3 = vector.broadcast %cst_1 : f32 to vector<16x1xf32>
    %4 = arith.divf %2, %3 : vector<16x1xf32>
    %5 = vector.broadcast %4 : vector<16x1xf32> to vector<16x32xf32>
    %6 = arith.subf %0, %5 : vector<16x32xf32>
    %7 = arith.mulf %6, %6 : vector<16x32xf32>
    %cst_2 = arith.constant dense<0.000000e+00> : vector<16xf32>
    %8 = vector.multi_reduction <add>, %7, %cst_2 [1] : vector<16x32xf32> to vector<16xf32>
    %9 = vector.shape_cast %8 : vector<16xf32> to vector<16x1xf32>
    %cst_3 = arith.constant 3.200000e+01 : f32
    %10 = vector.broadcast %cst_3 : f32 to vector<16x1xf32>
    %11 = arith.divf %9, %10 : vector<16x1xf32>
    %cst_4 = arith.constant 9.99999974E-6 : f32
    %12 = vector.broadcast %cst_4 : f32 to vector<16x1xf32>
    %13 = arith.addf %11, %12 : vector<16x1xf32>
    %14 = math.rsqrt %13 : vector<16x1xf32>
    %15 = vector.broadcast %14 : vector<16x1xf32> to vector<16x32xf32>
    %16 = arith.mulf %6, %15 : vector<16x32xf32>
    %c0_5 = arith.constant 0 : index
    %c0_6 = arith.constant 0 : index
    %17 = vector.load %arg3[%c0_5, %c0_6] : memref<1x32xf32, #tpu.memory_space<vmem>>, vector<1x32xf32>
    %18 = vector.broadcast %17 : vector<1x32xf32> to vector<16x32xf32>
    %19 = arith.mulf %16, %18 : vector<16x32xf32>
    %c0_7 = arith.constant 0 : index
    %c0_8 = arith.constant 0 : index
    %20 = vector.load %arg4[%c0_7, %c0_8] : memref<1x32xf32, #tpu.memory_space<vmem>>, vector<1x32xf32>
    %21 = vector.broadcast %20 : vector<1x32xf32> to vector<16x32xf32>
    %22 = arith.addf %19, %21 : vector<16x32xf32>
    %c0_9 = arith.constant 0 : index
    %c0_10 = arith.constant 0 : index
    %23 = vector.load %arg5[%c0_9, %c0_10] : memref<32x96xf32, #tpu.memory_space<vmem>>, vector<32x96xf32>
    %cst_11 = arith.constant dense<0.000000e+00> : vector<16x96xf32>
    %24 = tpu.matmul %22, %23, %cst_11 {dimension_numbers = #tpu.dot_dimension_numbers<[1], [0], [0], [1], [0, 0, 1, 1], [], []>} : vector<16x32xf32>, vector<32x96xf32>, vector<16x96xf32> -> vector<16x96xf32>
    %c0_12 = arith.constant 0 : index
    %c0_13 = arith.constant 0 : index
    %25 = vector.load %arg6[%c0_12, %c0_13] : memref<16x96xf32, #tpu.memory_space<vmem>>, vector<16x96xf32>
    tpu.vector_store %arg6[%c0_12, %c0_13], %24 {strides = array<i32>} : memref<16x96xf32, #tpu.memory_space<vmem>>, vector<16x96xf32>,
    return
  }
  func.func @transform_0(%arg0: i32, %arg1: i32) -> (i32, i32) {
    %c0_i32 = arith.constant 0 : i32
    %c0_i32_0 = arith.constant 0 : i32
    return %arg0, %c0_i32 : i32, i32
  }
  func.func @transform_1(%arg0: i32, %arg1: i32) -> (i32, i32) {
    %c0_i32 = arith.constant 0 : i32
    %c0_i32_0 = arith.constant 0 : i32
    %c0_i32_1 = arith.constant 0 : i32
    return %c0_i32, %c0_i32_0 : i32, i32
  }
  func.func @transform_2(%arg0: i32, %arg1: i32) -> (i32, i32) {
    %c0_i32 = arith.constant 0 : i32
    %c0_i32_0 = arith.constant 0 : i32
    %c0_i32_1 = arith.constant 0 : i32
    return %c0_i32, %c0_i32_0 : i32, i32
  }
  func.func @transform_3(%arg0: i32, %arg1: i32) -> (i32, i32) {
    %c0_i32 = arith.constant 0 : i32
    %c0_i32_0 = arith.constant 0 : i32
    return %c0_i32, %arg1 : i32, i32
  }
  func.func @transform_4(%arg0: i32, %arg1: i32) -> (i32, i32) {
    %c0_i32 = arith.constant 0 : i32
    return %arg0, %arg1 : i32, i32
  }
}

</mosaic_0001>

<bundles_post_ra>
// kernel: tpu_custom_call.1
= control target key start
LH: loop header
LB: loop body
LE: loop exit
PB: predicated region body
PF: predicated region fallthrough
CT: control target
= control target key end

     0   :  { %9 = vsyncpa [#allocation3], 0  ;;  %s503_s0 = inlined_call_operand.hbm [shape: f32[16,32], index: 0, kind: input, shape index: {}]   ;;  %s504_s1 = inlined_call_operand.hbm [shape: f32[1,32], index: 1, kind: input, shape index: {}]   ;;  %s505_s2 = inlined_call_operand.hbm [shape: f32[1,32], index: 2, kind: input, shape index: {}]   ;;  %s506_s3 = inlined_call_operand.hbm [shape: f32[32,96], index: 3, kind: input, shape index: {}]   ;;  %s507_s4 = inlined_call_operand.hbm [shape: f32[16,96], index: 4, kind: output, shape index: {}]  }
   0x1   :  { %10 = vsyncpa [#allocation6], 0 }
   0x2   :  { %11 = vsyncpa [#allocation9], 0 }
   0x3   :  { %12 = vsyncpa [#allocation4], 0  ;;  %s382_s15 = smov [#allocation5]   ;;  %s383_s17 = smov [#allocation2]  }
   0x4   :  { %s31_s16 = sshll.u32 %s382_s15, 4  ;;  %s18_s18 = sshll.u32 %s383_s17, 4  ;;  %s32_s16 = int_to_ptr.vmem [resolvable:$true] %s31_s16  ;;  %s414_s18 = int_to_ptr.vmem [resolvable:$true] %s18_s18 }
   0x5   :  { %s264_s21 = scalar_lea.hbm %s504_s1, 16 }
   0x6   :  { %p265_p0 = scmp.ne.s32.totalorder %s504_s1, %s264_s21  ;;  %p268_p1 = scmp.lt.u32.totalorder %s264_s21, %s504_s1 }
   0x8   :  { %p270_p2 = pnand %p268_p1, %p265_p0 }
   0xa   :  { %273 = shalt.err (!%p270_p2)
}
   0xb   :  { %s274_s26 = scalar_lea.vmem %s32_s16, 16  ;;  %s278_s27 = scalar_lea.vmem %s32_s16, 32 }
   0xc   :  { %p275_p3 = scmp.ne.s32.totalorder %s32_s16, %s274_s26  ;;  %p279_p4 = scmp.lt.s32.totalorder %s32_s16, %s32_s16 }
   0xd   :  { %p280_p5 = scmp.lt.s32.totalorder %s278_s27, %s274_s26 }
   0xf   :  { %p281_p6 = por %p280_p5, %p279_p4 }
  0x11   :  { %p282_p7 = pnand %p281_p6, %p275_p3 }
  0x13   :  { %285 = shalt.err (!%p282_p7)
}
  0x14   :  { %34 = dma.hbm_to_vmem [thread:$0]  %s504_s1, 16, %s32_s16, [#allocation6]  }
  0x15   :  { %s286_s6 = scalar_lea.hbm %s503_s0, 256 }
  0x16   :  { %p287_p8 = scmp.ne.s32.totalorder %s503_s0, %s286_s6  ;;  %p290_p9 = scmp.lt.u32.totalorder %s286_s6, %s503_s0 }
  0x18   :  { %p292_p10 = pnand %p290_p9, %p287_p8 }
  0x1a   :  { %295 = shalt.err (!%p292_p10)
}
  0x1b   :  { %s296_s11 = scalar_lea.vmem %s414_s18, 256  ;;  %p301_p12 = scmp.lt.s32.totalorder %s414_s18, %s414_s18 }
  0x1c   :  { %p297_p11 = scmp.ne.s32.totalorder %s414_s18, %s296_s11  ;;  %p302_p13 = scmp.lt.s32.totalorder %s296_s11, %s296_s11 }
  0x1e   :  { %p303_p0 = por %p302_p13, %p301_p12 }
  0x20   :  { %p304_p1 = pnand %p303_p0, %p297_p11 }
  0x22   :  { %307 = shalt.err (!%p304_p1)
}
  0x23   :  { %s384_s1 = smov 128   ;;  %s385_s12 = smov 8  }
  0x24   :  { %24 = dma.hbm_to_vmem [thread:$0]  %s503_s0, 256, %s414_s18, [#allocation3], %s384_s1, %s384_s1, %s385_s12  }
  0x25   :  { %s386_s15 = smov [#allocation7]   ;;  %s387_s17 = smov [#allocation8]  }
  0x26   :  { %s41_s16 = sshll.u32 %s386_s15, 4  ;;  %s50_s19 = sshll.u32 %s387_s17, 4  ;;  %s42_s16 = int_to_ptr.vmem [resolvable:$true] %s41_s16  ;;  %s448_s19 = int_to_ptr.vmem [resolvable:$true] %s50_s19 }
  0x27   :  { %s308_s22 = scalar_lea.hbm %s505_s2, 16 }
  0x28   :  { %p309_p2 = scmp.ne.s32.totalorder %s505_s2, %s308_s22  ;;  %p312_p3 = scmp.lt.u32.totalorder %s308_s22, %s505_s2 }
  0x2a   :  { %p314_p4 = pnand %p312_p3, %p309_p2 }
  0x2c   :  { %317 = shalt.err (!%p314_p4)
}
  0x2d   :  { %s318_s0 = scalar_lea.vmem %s42_s16, 16  ;;  %s322_s18 = scalar_lea.vmem %s42_s16, 32 }
  0x2e   :  { %p319_p5 = scmp.ne.s32.totalorder %s42_s16, %s318_s0  ;;  %p323_p6 = scmp.lt.s32.totalorder %s42_s16, %s42_s16 }
  0x2f   :  { %p324_p7 = scmp.lt.s32.totalorder %s322_s18, %s318_s0 }
  0x31   :  { %p325_p8 = por %p324_p7, %p323_p6 }
  0x33   :  { %p326_p9 = pnand %p325_p8, %p319_p5 }
  0x35   :  { %329 = shalt.err (!%p326_p9)
}
  0x36   :  { %44 = dma.hbm_to_vmem [thread:$0]  %s505_s2, 16, %s42_s16, [#allocation6]  }
  0x37   :  { %s330_s5 = scalar_lea.hbm %s506_s3, 512 }
  0x38   :  { %p331_p10 = scmp.ne.s32.totalorder %s506_s3, %s330_s5  ;;  %p334_p11 = scmp.lt.u32.totalorder %s330_s5, %s506_s3 }
  0x3a   :  { %p336_p12 = pnand %p334_p11, %p331_p10 }
  0x3c   :  { %339 = shalt.err (!%p336_p12)
}
  0x3d   :  { %s340_s10 = scalar_lea.vmem %s448_s19, 512  ;;  %p345_p0 = scmp.lt.s32.totalorder %s448_s19, %s448_s19 }
  0x3e   :  { %p341_p13 = scmp.ne.s32.totalorder %s448_s19, %s340_s10  ;;  %p346_p1 = scmp.lt.s32.totalorder %s340_s10, %s340_s10 }
  0x40   :  { %p347_p2 = por %p346_p1, %p345_p0 }
  0x42   :  { %p348_p3 = pnand %p347_p2, %p341_p13 }
  0x44   :  { %351 = shalt.err (!%p348_p3)
}
  0x45   :  { %56 = dma.hbm_to_vmem [thread:$0]  %s506_s3, 512, %s448_s19, [#allocation9], %s384_s1, %s384_s1, %s385_s12  }
  0x46   :  { %374 = dma.done.wait [#allocation3], 256  }
  0x47   :  { %375 = vsyncadd [#allocation3], 4294967040 }
  0x48   :  { %376 = dma.done.wait [#allocation6], 32  }
  0x49   :  { %377 = vsyncadd [#allocation6], 4294967264 }
  0x4a   :  { %378 = dma.done.wait [#allocation9], 512  }
  0x4b   :  { %379 = vsyncadd [#allocation9], 4294966784  ;;  %vm71_vm0 = vcmask 261120   ;;  %v69_v0 = vld [vmem:[#allocation2] sm:$0xff]  ;;  %v70_v1 = vld [vmem:[#allocation2 + $0x8] sm:$0xff]  ;;  %s388_s3 = smov [#allocation10]  }
  0x4c   :  { %v72_v2 = vsel %vm71_vm0, %v69_v0, 0.0  ;;  %v75_v3 = vsel %vm71_vm0, %v70_v1, 0.0  ;;  %v117_v14 = vld [vmem:[#allocation8] sm:$0xff]  ;;  %v118_v15 = vld [vmem:[#allocation8 + $0x8] sm:$0xff]  ;;  %v119_v16 = vld [vmem:[#allocation8 + $0x10] sm:$0xff]  ;;  %s210_s13 = sshll.u32 %s388_s3, 4  ;;  %s211_s13 = int_to_ptr.vmem [resolvable:$true] %s210_s13 }
  0x4d   :  { %73 = vadd.xlane.f32.xlu0 %v72_v2  ;;  %v245_v17 = vpack.c.bf16 %v118_v15, %v117_v14  ;;  %v120_v18 = vld [vmem:[#allocation8 + $0x18] sm:$0xff]  ;;  %vm202_vm1 = vcmask 785408   ;;  %s352_s14 = scalar_lea.vmem %s211_s13, 256  ;;  %p357_p5 = scmp.lt.s32.totalorder %s211_s13, %s211_s13 }
  0x4e   :  { %v249_v19 = vpack.c.bf16 %v120_v18, %v119_v16  ;;  %v224_v27 = vld [vmem:[#allocation5] ss:$0 sm:$0xff]  ;;  %v225_v29 = vld [vmem:[#allocation7] ss:$0 sm:$0xff]  ;;  %p353_p4 = scmp.ne.s32.totalorder %s211_s13, %s352_s14  ;;  %p358_p6 = scmp.lt.s32.totalorder %s352_s14, %s352_s14 }
  0x4f   :  { %246 = vmatprep.subr.bf16.mxu0 %v245_v17 }
  0x50   :  { %248 = vmatpush3.bf16.msra.mxu0 %v245_v17  ;;  %p359_p7 = por %p358_p6, %p357_p5 }
  0x51   :  { %76 = vadd.xlane.f32.xlu0 %v75_v3  ;;  %250 = vmatprep.subr.bf16.mxu0 %v249_v19 }
  0x52   :  { %p360_p8 = pnand %p359_p7, %p353_p4 }
  0x54   :  { %252 = vmatpush3.bf16.msra.mxu0 %v249_v19 }
  0xda   :  { %v74_v4 = vpop.xlane.xlu0 %73 }
  0xdb   :  { %v79_v5 = vmul.f32 0.03125, %v74_v4 }
  0xdd   :  { %v81_v6 = vsub.f32 %v69_v0, %v79_v5 }
  0xde   :  { %v77_v7 = vpop.xlane.xlu0 %76 }
  0xdf   :  { %v80_v8 = vmul.f32 0.03125, %v77_v7  ;;  %v83_v9 = vmul.f32 %v81_v6, %v81_v6 }
  0xe1   :  { %v82_v10 = vsub.f32 %v70_v1, %v80_v8  ;;  %v85_v11 = vsel %vm71_vm0, %v83_v9, 0.0 }
  0xe2   :  { %86 = vadd.xlane.f32.xlu1 %v85_v11 }
  0xe3   :  { %v84_v12 = vmul.f32 %v82_v10, %v82_v10 }
  0xe5   :  { %v88_v13 = vsel %vm71_vm0, %v84_v12, 0.0 }
  0xe6   :  { %89 = vadd.xlane.f32.xlu1 %v88_v13 }
 0x16f   :  { %v87_v20 = vpop.xlane.xlu1 %86 }
 0x170   :  { %v91_v21 = vmul.f32 0.03125, %v87_v20 }
 0x172   :  { %v93_v22 = vadd.f32 1e-05, %v91_v21 }
 0x173   :  { %v90_v23 = vpop.xlane.xlu1 %89 }
 0x174   :  { %260 = vrsqrt.f32 %v93_v22  ;;  %v92_v24 = vmul.f32 0.03125, %v90_v23 }
 0x176   :  { %v94_v25 = vadd.f32 1e-05, %v92_v24 }
 0x178   :  { %262 = vrsqrt.f32 %v94_v25 }
 0x17e   :  { %v261_v26 = vpop.eup %260 }
 0x17f   :  { %v97_v28 = vmul.f32 %v261_v26, %v81_v6 }
 0x181   :  { %v106_v30 = vmul.f32 %v224_v27, %v97_v28 }
 0x182   :  { %v263_v31 = vpop.eup %262 }
 0x183   :  { %v98_v32 = vmul.f32 %v263_v31, %v82_v10  ;;  %v115_v33 = vadd.f32 %v225_v29, %v106_v30 }
 0x185   :  { %v107_v34 = vmul.f32 %v224_v27, %v98_v32  ;;  %242 = vmatprep.mubr.msk.f32.mxu0 %vm71_vm0, %v115_v33 }
 0x187   :  { %v116_v35 = vadd.f32 %v225_v29, %v107_v34 }
 0x189   :  { %243 = vmatmul.mubr.msk.f32.vlgmr.msra.gmra.mrb[0].mxu0 %vm71_vm0, %v116_v35 }
 0x25c   :  { %v244_v36 = vpop.f32.mrb[0].mxu0 }
 0x25d   :  { %204 = vst.msk [vmem:[#allocation10 + $0x8] sm:$0xff] %vm202_vm1, %v244_v36  ;;  %v193_v37 = vpop.f32.mrb[1].mxu0 }
 0x25e   :  { %203 = vst.msk [vmem:[#allocation10] sm:$0xff] %vm202_vm1, %v193_v37 }
 0x25f   :  { %363 = shalt.err (!%p360_p8)
}
 0x260   :  { %s364_s17 = scalar_lea.hbm %s507_s4, 256 }
 0x261   :  { %p365_p9 = scmp.ne.s32.totalorder %s507_s4, %s364_s17  ;;  %p368_p10 = scmp.lt.u32.totalorder %s364_s17, %s507_s4 }
 0x263   :  { %p370_p11 = pnand %p368_p10, %p365_p9 }
 0x265   :  { %373 = shalt.err (!%p370_p11)
}
 0x266   :  { %216 = dma.vmem_to_hbm [thread:$0]  %s211_s13, 256, %s507_s4, [#allocation4], %s384_s1, %s384_s1, %s385_s12  }
 0x267   :  { %380 = dma.done.wait [#allocation4], 256  }
 0x268   :  { %381 = vsyncadd [#allocation4], 4294967040 }
 0x269   :  { %220 = vsyncpa [#allocation3], 1 }
 0x26a   :  { %221 = vsyncpa [#allocation6], 1 }
 0x26b   :  { %222 = vsyncpa [#allocation9], 1 }
 0x26c   :  { %223 = vsyncpa [#allocation4], 1 }

</bundles_post_ra>
